<compile_context>
chip_gen: v7x
topology: tpu7x:2x2x1
jax: 0.10.0
libtpu: 0.0.40
codegen_flags: <defaults>
</compile_context>

<pallas_src>
import functools

import numpy as np
import jax
import jax.numpy as jnp
from jax.experimental import pallas as pl
from jax.experimental.pallas import tpu as pltpu

PAD = 128          # lane padding for the flattened alpha vector
ROW_PAD = 8        # sublane padding granularity for client rows


def _round_up(n, m):
    return max(m, ((n + m - 1) // m) * m)


# ----------------------------------------------------------------------------
# Pallas kernels
# ----------------------------------------------------------------------------
def _alpha_init_kernel(feat_ref, alpha_ref, loss_ref, *, num_alpha):
    # Mirrors torch `_initialize_alphas`: loss = mean(feature * alpha) per
    # client.  Output is lane-dense (loss broadcast across lanes).
    lane = jax.lax.broadcasted_iota(jnp.int32, feat_ref.shape, 1)
    mask = (lane < num_alpha).astype(jnp.float32)
    logits = feat_ref[...] * alpha_ref[...] * mask
    loss = jnp.sum(logits, axis=1, keepdims=True) / jnp.float32(num_alpha)
    loss_ref[...] = jnp.broadcast_to(loss, loss_ref.shape)


def alpha_forward_all(feat_pad, alpha_pad, num_alpha):
    rows, pad = feat_pad.shape
    return pl.pallas_call(
        functools.partial(_alpha_init_kernel, num_alpha=num_alpha),
        out_shape=jax.ShapeDtypeStruct((rows, pad), jnp.float32),
        in_specs=[pl.BlockSpec(memory_space=pltpu.MemorySpace.VMEM)] * 2,
        out_specs=pl.BlockSpec(memory_space=pltpu.MemorySpace.VMEM),
    )(feat_pad, alpha_pad)


def _fused_step_kernel(alpha_ref, m_ref, v_ref, onehot_ref, scal_ref, cm_ref,
                       alpha_out, m_out, v_out,
                       *, num_alpha, seg_bounds, wd, b1, b2, eps):
    """Single-block fused step over the whole padded client state.

    alpha/m/v/onehot/scal : (rows, PAD) f32   (rows = padded client count)
    cm                    : (PAD, PAD) f32    segment co-membership (0/1)
    scal lanes            : 0=reward, 1=lr/bias_corr1, 2=1/bias_corr2,
                            3=active flag (1 for participating clients)
    """
    alpha = alpha_ref[...]
    lane = jax.lax.broadcasted_iota(jnp.int32, alpha.shape, 1)
    valid = lane < num_alpha
    mask = valid.astype(jnp.float32)

    # Exact per-segment max stabilizer (matches the torch/numpy reference and
    # stays finite no matter how far the alphas of different segments drift).
    # Static unroll over ~17 tiny segments; pure VPU/XLU filler.
    neg = jnp.float32(-1e30)
    xmax = jnp.zeros_like(alpha)
    for (s, l) in seg_bounds:
        seg_mask = jnp.logical_and(lane >= s, lane < s + l)
        seg_max = jnp.max(jnp.where(seg_mask, alpha, neg),
                          axis=1, keepdims=True)
        xmax = jnp.where(seg_mask, seg_max, xmax)

    # Segment-wise softmax along lanes.  The (PAD, PAD) co-membership matmul
    # broadcasts every segment's sum back onto its member lanes in one MXU op.
    ex = jnp.exp(alpha - xmax) * mask
    denom = jnp.dot(ex, cm_ref[...], preferred_element_type=jnp.float32)
    prob = ex / (denom + (1.0 - mask))          # padded lanes -> 0, no NaNs

    # Per-row scalars, broadcast across lanes inside the kernel.
    scal = scal_ref[...]
    rew = scal[:, 0:1]
    step = scal[:, 1:2]       # lr / (1 - b1**t)
    ibc2 = scal[:, 2:3]       # 1 / (1 - b2**t)
    active = scal[:, 3:4] > 0.5

    # REINFORCE gradient: reward * (softmax - onehot); zero on padded lanes.
    grad = rew * (prob - onehot_ref[...])

    # torch.optim.Adam(lr, betas=(b1, b2), weight_decay=wd) semantics.
    g = grad + wd * alpha
    m_new = b1 * m_ref[...] + (1.0 - b1) * g
    v_new = b2 * v_ref[...] + (1.0 - b2) * g * g
    upd = step * m_new / (jnp.sqrt(v_new * ibc2) + eps)

    # Non-participating clients and sublane-padding rows keep state unchanged.
    alpha_out[...] = jnp.where(active, alpha - upd * mask, alpha)
    m_out[...] = jnp.where(active, m_new, m_ref[...])
    v_out[...] = jnp.where(active, v_new, v_ref[...])


def _make_step_fn(c_pad, num_alpha, seg_bounds, wd, b1, b2, eps):
    """One gridless pallas_call; alpha/m/v updated truly in place."""
    kernel = functools.partial(
        _fused_step_kernel, num_alpha=num_alpha, seg_bounds=seg_bounds,
        wd=wd, b1=b1, b2=b2, eps=eps)
    call = pl.pallas_call(
        kernel,
        out_shape=(jax.ShapeDtypeStruct((c_pad, PAD), jnp.float32),) * 3,
        in_specs=[pl.BlockSpec(memory_space=pltpu.MemorySpace.VMEM)] * 6,
        out_specs=(pl.BlockSpec(memory_space=pltpu.MemorySpace.VMEM),) * 3,
        input_output_aliases={0: 0, 1: 1, 2: 2},     # alpha, m, v in place
    )
    # Donating the state arrays lets XLA honour the aliasing end-to-end
    # (no defensive copy of alphas/m/v before the custom call).
    return jax.jit(call, donate_argnums=(0, 1, 2))


# ----------------------------------------------------------------------------
# Architect (arch-parameter side) in JAX
# ----------------------------------------------------------------------------
class Architect:
    """JAX/Pallas port of the PFedRLNAS ViT Architect (arch parameters + step)."""

    # Synthetic, deterministic stand-in for model.cfg_candidates (NASViT-style).
    CFG_CANDIDATES = {
        "resolution": [160, 192, 224],
        "width": [[16, 24], [24, 32, 40], [48, 64], [80, 96, 112]],
        "depth": [[1, 2], [2, 3], [2, 3, 4], [3, 4]],
        "kernel_size": [[3, 5], [3, 5], [3, 5], [3]],
        "expand_ratio": [[1], [3, 4], [4, 6], [6]],
    }

    def __init__(self, total_clients=4, learning_rate=1e-2, weight_decay=1e-3,
                 lambda_time=0.1, lambda_neg=0.1):
        self.client_nums = int(total_clients)
        self.lr = float(learning_rate)
        self.wd = float(weight_decay)
        self.b1, self.b2, self.eps = 0.5, 0.999, 1e-8
        self.lambda_time = lambda_time
        self.lambda_neg = lambda_neg
        self.baseline = {}
        self._rng = np.random.default_rng(0)
        self._initialize_alphas()
        self._step_fn = _make_step_fn(
            self.c_pad, self.num_alpha,
            tuple(zip(self.seg_start, self.seg_len)),
            self.wd, self.b1, self.b2, self.eps)

    # ---- stop_index construction (exactly mirrors the torch code) ----
    def _build_stop_index(self):
        cfg = self.CFG_CANDIDATES
        stop_index = [-1]
        stop_index.append(len(cfg["resolution"]) - 1)
        for name in ("width", "depth", "kernel_size", "expand_ratio"):
            for cand in cfg[name]:
                stop_index.append(stop_index[-1] + len(cand))
        return stop_index

    def _initialize_alphas(self):
        self.stop_index = self._build_stop_index()
        self.num_alpha = self.stop_index[-1] + 1
        self.num_edges = len(self.stop_index) - 1
        self.seg_start = [self.stop_index[e] + 1 for e in range(self.num_edges)]
        self.seg_len = [self.stop_index[e + 1] - self.stop_index[e]
                        for e in range(self.num_edges)]
        assert self.num_alpha <= PAD
        self.c_pad = _round_up(self.client_nums, ROW_PAD)

        # Static segment co-membership matrix:
        #   CM[q, p] = 1  iff flat positions q and p belong to the same edge.
        seg_id = np.full(PAD, -1, np.int32)
        for e in range(self.num_edges):
            seg_id[self.seg_start[e]:self.seg_start[e] + self.seg_len[e]] = e
        cm = ((seg_id[:, None] == seg_id[None, :]) & (seg_id[:, None] >= 0))
        self.co_member = jnp.asarray(cm.astype(np.float32))       # (PAD, PAD)

        # Stacked per-client arch parameters + Adam state, stored row/lane
        # padded once so the step never needs gather / pad / scatter ops.
        # Alphas start at 0, as in torch.
        self.alphas_all = jnp.zeros((self.c_pad, PAD), jnp.float32)
        self.adam_m = jnp.zeros((self.c_pad, PAD), jnp.float32)
        self.adam_v = jnp.zeros((self.c_pad, PAD), jnp.float32)
        self.adam_t = [0] * self.client_nums

        # Mirror torch _initialize_alphas: loss = mean(feature * alpha) per
        # client, gradients discarded (zero_grad).  One batched Pallas call.
        key = jax.random.PRNGKey(0)
        feat_vals = jax.random.normal(key, (self.client_nums, self.num_alpha),
                                      jnp.float32)
        feat = jnp.zeros((self.c_pad, PAD), jnp.float32).at[
            :self.client_nums, :self.num_alpha].set(feat_vals)
        loss = alpha_forward_all(feat, self.alphas_all, self.num_alpha)
        jax.block_until_ready(loss)

    def arch_parameters(self):
        """Returns architecture parameters (one alpha vector per client)."""
        return [[self.alphas_all[cid, :self.num_alpha]]
                for cid in range(self.client_nums)]

    # ---- reward bookkeeping (scalar / dict glue, exact port) ----
    def _compute_reward(self, reward_list, client_id_list):
        accuracy_list, round_time_list, neg_ratio = reward_list
        accuracy = np.array(accuracy_list, dtype=np.float64)
        round_time = np.array(round_time_list, dtype=np.float64)

        def _add(acc_list, cid_list):
            for cid, acc in zip(cid_list, acc_list):
                if cid in self.baseline:
                    self.baseline[cid] = max(self.baseline[cid], acc)
                else:
                    self.baseline[cid] = acc

        if not self.baseline:
            _add(accuracy_list, client_id_list)
        avg_accuracy = np.mean(np.array(list(self.baseline.values()),
                                        dtype=np.float64))
        reward = (accuracy - avg_accuracy
                  - self.lambda_time * (round_time - np.min(round_time))
                  - self.lambda_neg * np.array(neg_ratio, dtype=np.float64))
        _add(accuracy_list, client_id_list)
        return reward

    # ---- architect step: one in-place, gridless Pallas launch per round ----
    def step(self, epoch_reward, epoch_index, client_id_list):
        """Update architecture parameters for the participating clients."""
        rewards = self._compute_reward(epoch_reward, client_id_list)

        # Tiny host-built auxiliary planes (no XLA ops, ~clients*1 KiB DMA).
        onehot = np.zeros((self.c_pad, PAD), np.float32)
        scal = np.zeros((self.c_pad, PAD), np.float32)
        for i, cid in enumerate(client_id_list):
            r = int(cid) - 1
            for e in range(self.num_edges):
                onehot[r, self.seg_start[e] + int(epoch_index[i][e])] = 1.0
            self.adam_t[r] += 1
            t = self.adam_t[r]
            scal[r, 0] = rewards[i]                          # reward
            scal[r, 1] = self.lr / (1.0 - self.b1 ** t)      # lr / bias_corr1
            scal[r, 2] = 1.0 / (1.0 - self.b2 ** t)          # 1 / bias_corr2
            scal[r, 3] = 1.0                                 # active this round

        self.alphas_all, self.adam_m, self.adam_v = self._step_fn(
            self.alphas_all, self.adam_m, self.adam_v,
            onehot, scal, self.co_member)
        return rewards

    # ---- sampling helpers (host-side, mirror the torch module) ----
    def get_index(self, prob, length):
        p = np.asarray(prob, dtype=np.float64)
        p = np.exp(p - p.max())
        p = p / p.sum()
        return int(self._rng.choice(np.arange(length), 1, replace=False, p=p)[0])

    def sample_config(self, client_id):
        cfg_candidate = self.CFG_CANDIDATES
        alpha = np.asarray(self.alphas_all[client_id, :self.num_alpha])
        cfg = {}
        sp = 1
        length = self.stop_index[sp] + 1
        prob = alpha[:self.stop_index[sp] + 1]
        cfg["resolution"] = cfg_candidate["resolution"][self.get_index(prob, length)]
        sp += 1
        for name in ("width", "depth", "kernel_size", "expand_ratio"):
            chosen_list = []
            for cand in cfg_candidate[name]:
                length = self.stop_index[sp] - self.stop_index[sp - 1]
                prob = alpha[self.stop_index[sp - 1] + 1:self.stop_index[sp] + 1]
                chosen_list.append(cand[self.get_index(prob, length)])
                sp += 1
            cfg[name] = chosen_list
        return cfg

    def extract_index(self, subnets_config):
        cfg_c = self.CFG_CANDIDATES
        epoch_index = []
        for cfg in subnets_config:
            index = [cfg_c["resolution"].index(cfg["resolution"])]
            for name in ("width", "depth", "kernel_size", "expand_ratio"):
                for chosen_val, cand_list in zip(cfg[name], cfg_c[name]):
                    index.append(cand_list.index(chosen_val))
            epoch_index.append(index)
        return epoch_index

    def forward(self, feature):
        # TODO(synk): AttentiveNasDynamicModel (the ViT supernet) is not defined
        # in the provided source; its forward cannot be reproduced here.
        raise NotImplementedError("Supernet forward is not available in this port.")


# ----------------------------------------------------------------------------
if __name__ == "__main__":
    arch = Architect(total_clients=4)

    # Two participating clients, deterministic synthetic rewards / indices.
    client_ids = [1, 2]
    accuracy_list = [0.61, 0.55]
    round_time_list = [10.0, 12.0]
    neg_ratio_list = [0.05, 0.10]
    epoch_index = [
        [e % arch.seg_len[e] for e in range(arch.num_edges)],
        [(e + 1) % arch.seg_len[e] for e in range(arch.num_edges)],
    ]

    # Host numpy reference of _compute_grad + torch Adam (same rewards).
    ref_alpha = np.zeros((4, arch.num_alpha), np.float32)
    ref_m = np.zeros_like(ref_alpha)
    ref_v = np.zeros_like(ref_alpha)
    ref_t = [0, 0, 0, 0]

    def ref_step(rewards):
        for i, cid in enumerate(client_ids):
            c = cid - 1
            a = ref_alpha[c].copy()
            grad = np.zeros_like(a)
            for e in range(arch.num_edges):
                s, l = arch.seg_start[e], arch.seg_len[e]
                seg = a[s:s + l]
                ex = np.exp(seg - seg.max())
                p = ex / ex.sum()
                g = p.copy()
                g[epoch_index[i][e]] -= 1.0
                grad[s:s + l] += np.float32(rewards[i]) * g
            g = grad + np.float32(arch.wd) * a
            ref_m[c] = arch.b1 * ref_m[c] + (1.0 - arch.b1) * g
            ref_v[c] = arch.b2 * ref_v[c] + (1.0 - arch.b2) * g * g
            ref_t[c] += 1
            t = ref_t[c]
            upd = (arch.lr / (1.0 - arch.b1 ** t)) * ref_m[c] / (
                np.sqrt(ref_v[c] / (1.0 - arch.b2 ** t)) + arch.eps)
            ref_alpha[c] = a - upd

    # Two fused steps (the second one exercises the softmax on non-zero alphas
    # and reuses the single cached jit trace / executable).
    for _ in range(2):
        rewards = arch.step((accuracy_list, round_time_list, neg_ratio_list),
                            epoch_index, client_ids)
        ref_step(rewards)

    jax.block_until_ready(arch.alphas_all)
    state = np.asarray(arch.alphas_all)
    got = state[:arch.client_nums, :arch.num_alpha]
    if not np.allclose(got, ref_alpha, rtol=5e-4, atol=2e-5):
        raise SystemExit("MISMATCH: max abs err %.3e"
                         % float(np.max(np.abs(got - ref_alpha))))
    if np.any(state[:, arch.num_alpha:] != 0.0):
        raise SystemExit("Padding lanes were corrupted")
    if np.any(state[arch.client_nums:, :] != 0.0):
        raise SystemExit("Padding rows were corrupted")

    print("KERNEL_OK")
</pallas_src>

<mosaic_0001>
module attributes {stable_mosaic.version = 11 : i64} {
  func.func @_alpha_init_kernel(%arg0: memref<8x128xf32, #tpu.memory_space<vmem>>, %arg1: memref<8x128xf32, #tpu.memory_space<vmem>>, %arg2: memref<8x128xf32, #tpu.memory_space<vmem>>) attributes {dimension_semantics = [], scalar_prefetch = 0 : i64, scratch_operands = 0 : i64, tpu.core_type = #tpu.core_type<tc>} {
    %0 = tpu.iota {dimensions = array<i32: 1>} : vector<8x128xi32>
    %c35_i32 = arith.constant 35 : i32
    %1 = vector.broadcast %c35_i32 : i32 to vector<8x128xi32>
    %2 = arith.cmpi slt, %0, %1 : vector<8x128xi32>
    %3 = arith.extui %2 : vector<8x128xi1> to vector<8x128xi32>
    %4 = arith.sitofp %3 : vector<8x128xi32> to vector<8x128xf32>
    %c0 = arith.constant 0 : index
    %c0_0 = arith.constant 0 : index
    %5 = vector.load %arg0[%c0, %c0_0] : memref<8x128xf32, #tpu.memory_space<vmem>>, vector<8x128xf32>
    %c0_1 = arith.constant 0 : index
    %c0_2 = arith.constant 0 : index
    %6 = vector.load %arg1[%c0_1, %c0_2] : memref<8x128xf32, #tpu.memory_space<vmem>>, vector<8x128xf32>
    %7 = arith.mulf %5, %6 : vector<8x128xf32>
    %8 = arith.mulf %7, %4 : vector<8x128xf32>
    %cst = arith.constant dense<0.000000e+00> : vector<8xf32>
    %9 = vector.multi_reduction <add>, %8, %cst [1] : vector<8x128xf32> to vector<8xf32>
    %10 = vector.shape_cast %9 : vector<8xf32> to vector<8x1xf32>
    %cst_3 = arith.constant 3.500000e+01 : f32
    %11 = vector.broadcast %cst_3 : f32 to vector<8x1xf32>
    %12 = arith.divf %10, %11 : vector<8x1xf32>
    %13 = vector.shape_cast %12 : vector<8x1xf32> to vector<8x1xf32>
    %14 = vector.broadcast %13 : vector<8x1xf32> to vector<8x128xf32>
    %c0_4 = arith.constant 0 : index
    %c0_5 = arith.constant 0 : index
    %15 = vector.load %arg2[%c0_4, %c0_5] : memref<8x128xf32, #tpu.memory_space<vmem>>, vector<8x128xf32>
    tpu.vector_store %arg2[%c0_4, %c0_5], %14 {strides = array<i32>} : memref<8x128xf32, #tpu.memory_space<vmem>>, vector<8x128xf32>,
    return
  }
}

</mosaic_0001>

<bundles_post_ra>
// kernel: tpu_custom_call.1
= control target key start
LH: loop header
LB: loop body
LE: loop exit
PB: predicated region body
PF: predicated region fallthrough
CT: control target
= control target key end

     0   :  { %7 = vsyncpa [#allocation3], 0  ;;  %s198_s0 = inlined_call_operand.hbm [shape: f32[8,128], index: 0, kind: input, shape index: {}]   ;;  %s199_s1 = inlined_call_operand.hbm [shape: f32[8,128], index: 1, kind: input, shape index: {}]   ;;  %s200_s2 = inlined_call_operand.hbm [shape: f32[8,128], index: 2, kind: output, shape index: {}]  }
   0x1   :  { %8 = vsyncpa [#allocation6], 0 }
   0x2   :  { %9 = vsyncpa [#allocation4], 0  ;;  %s143_s9 = smov [#allocation2]   ;;  %s144_s11 = smov [#allocation5]  }
   0x3   :  { %s16_s10 = sshll.u32 %s143_s9, 4  ;;  %s26_s12 = sshll.u32 %s144_s11, 4  ;;  %s17_s10 = int_to_ptr.vmem [resolvable:$true] %s16_s10  ;;  %s27_s12 = int_to_ptr.vmem [resolvable:$true] %s26_s12 }
   0x4   :  { %s71_s15 = scalar_lea.hbm %s198_s0, 128 }
   0x5   :  { %p72_p0 = scmp.ne.s32.totalorder %s198_s0, %s71_s15  ;;  %p75_p1 = scmp.lt.u32.totalorder %s71_s15, %s198_s0 }
   0x7   :  { %p77_p2 = pnand %p75_p1, %p72_p0 }
   0x9   :  { %80 = shalt.err (!%p77_p2)
}
   0xa   :  { %s81_s20 = scalar_lea.vmem %s17_s10, 128  ;;  %p86_p4 = scmp.lt.s32.totalorder %s17_s10, %s17_s10 }
   0xb   :  { %p82_p3 = scmp.ne.s32.totalorder %s17_s10, %s81_s20  ;;  %p87_p5 = scmp.lt.s32.totalorder %s81_s20, %s81_s20 }
   0xd   :  { %p88_p6 = por %p87_p5, %p86_p4 }
   0xf   :  { %p89_p7 = pnand %p88_p6, %p82_p3 }
  0x11   :  { %92 = shalt.err (!%p89_p7)
}
  0x12   :  { %19 = dma.hbm_to_vmem [thread:$0]  %s198_s0, 128, %s17_s10, [#allocation3]  }
  0x13   :  { %s93_s25 = scalar_lea.hbm %s199_s1, 128 }
  0x14   :  { %p94_p8 = scmp.ne.s32.totalorder %s199_s1, %s93_s25  ;;  %p97_p9 = scmp.lt.u32.totalorder %s93_s25, %s199_s1 }
  0x16   :  { %p99_p10 = pnand %p97_p9, %p94_p8 }
  0x18   :  { %102 = shalt.err (!%p99_p10)
}
  0x19   :  { %s103_s30 = scalar_lea.vmem %s27_s12, 128  ;;  %p108_p12 = scmp.lt.s32.totalorder %s27_s12, %s27_s12 }
  0x1a   :  { %p104_p11 = scmp.ne.s32.totalorder %s27_s12, %s103_s30  ;;  %p109_p13 = scmp.lt.s32.totalorder %s103_s30, %s103_s30 }
  0x1c   :  { %p110_p0 = por %p109_p13, %p108_p12 }
  0x1e   :  { %p111_p1 = pnand %p110_p0, %p104_p11 }
  0x20   :  { %114 = shalt.err (!%p111_p1)
}
  0x21   :  { %29 = dma.hbm_to_vmem [thread:$0]  %s199_s1, 128, %s27_s12, [#allocation6]  }
  0x22   :  { %137 = dma.done.wait [#allocation3], 128  }
  0x23   :  { %138 = vsyncadd [#allocation3], 4294967168 }
  0x24   :  { %139 = dma.done.wait [#allocation6], 128  }
  0x25   :  { %140 = vsyncadd [#allocation6], 4294967168  ;;  %v36_v0 = vlaneseq  ;;  %v145_v2 = vmov 0.0   ;;  %v41_v4 = vld [vmem:[#allocation2] sm:$0xff]  ;;  %v42_v5 = vld [vmem:[#allocation5] sm:$0xff]  ;;  %s146_s4 = smov [#allocation7]  }
  0x26   :  { %v43_v6 = vmul.f32 %v42_v5, %v41_v4  ;;  %s56_s5 = sshll.u32 %s146_s4, 4  ;;  %s57_s5 = int_to_ptr.vmem [resolvable:$true] %s56_s5 }
  0x27   :  { %v37_v1 = vand.u32 127, %v36_v0  ;;  %s115_s1 = scalar_lea.vmem %s57_s5, 128  ;;  %p120_p3 = scmp.lt.s32.totalorder %s57_s5, %s57_s5 }
  0x28   :  { %p116_p2 = scmp.ne.s32.totalorder %s57_s5, %s115_s1  ;;  %p121_p4 = scmp.lt.s32.totalorder %s115_s1, %s115_s1 }
  0x29   :  { %vm38_vm0 = vcmp.lt.s32.totalorder %v37_v1, 35 }
  0x2a   :  { %v66_v3 = vsel %vm38_vm0, 1.0, %v145_v2  ;;  %p122_p5 = por %p121_p4, %p120_p3 }
  0x2b   :  { %v44_v7 = vmul.f32 %v66_v3, %v43_v6 }
  0x2c   :  { %p123_p6 = pnand %p122_p5, %p116_p2 }
  0x2d   :  { %45 = vadd.xlane.f32.xlu0 %v44_v7 }
  0xba   :  { %v46_v8 = vpop.xlane.xlu0 %45 }
  0xbb   :  { %v48_v9 = vmul.f32 0.028571429, %v46_v8 }
  0xbd   :  { %49 = vst [vmem:[#allocation7] sm:$0xff] %v48_v9 }
  0xbe   :  { %126 = shalt.err (!%p123_p6)
}
  0xbf   :  { %s127_s8 = scalar_lea.hbm %s200_s2, 128 }
  0xc0   :  { %p128_p7 = scmp.ne.s32.totalorder %s200_s2, %s127_s8  ;;  %p131_p8 = scmp.lt.u32.totalorder %s127_s8, %s200_s2 }
  0xc2   :  { %p133_p9 = pnand %p131_p8, %p128_p7 }
  0xc4   :  { %136 = shalt.err (!%p133_p9)
}
  0xc5   :  { %59 = dma.vmem_to_hbm [thread:$0]  %s57_s5, 128, %s200_s2, [#allocation4]  }
  0xc6   :  { %141 = dma.done.wait [#allocation4], 128  }
  0xc7   :  { %142 = vsyncadd [#allocation4], 4294967168 }
  0xc8   :  { %63 = vsyncpa [#allocation3], 1 }
  0xc9   :  { %64 = vsyncpa [#allocation6], 1 }
  0xca   :  { %65 = vsyncpa [#allocation4], 1 }

</bundles_post_ra>
